<compile_context>
chip_gen: v7x
topology: tpu7x:2x2x1
jax: 0.10.0
libtpu: 0.0.40
codegen_flags: <defaults>
</compile_context>

<pallas_src>
import math

import jax
import jax.numpy as jnp
from jax import lax
from jax.experimental import pallas as pl
from jax.experimental.pallas import tpu as pltpu

# Scaled-down dims (reference: hidden=768, heads=12, intermediate=3072).
HIDDEN = 32
NUM_HEADS = 4
HEAD_DIM = HIDDEN // NUM_HEADS
INTERMEDIATE = 128
BATCH = 2
SEQ = 16
LN_EPS = 1e-5  # nn.LayerNorm default eps

# Packed small-parameter buffer: one (8, 128) f32 tile.
#   row 0: b1 (INTERMEDIATE,)   row 1: b2 (HIDDEN,)
#   row 2: gamma1               row 3: beta1
#   row 4: gamma2               row 5: beta2
_PACK_ROWS, _PACK_LANES = 8, 128
assert INTERMEDIATE <= _PACK_LANES and HIDDEN <= _PACK_LANES


def _layernorm(x, gamma, beta):
    mean = jnp.mean(x, axis=-1, keepdims=True)
    var = jnp.mean(jnp.square(x - mean), axis=-1, keepdims=True)
    return (x - mean) * lax.rsqrt(var + LN_EPS) * gamma + beta


def flash_layer_kernel(xh_ref, mask_ref, w1_ref, w2_ref, pvec_ref, o_ref):
    """One batch element per grid step; the whole layer stays on-chip."""
    xh = xh_ref[0].astype(jnp.float32)        # (NH, S, HD) head-split input
    mask = mask_ref[0].astype(jnp.float32)    # (1, S) additive key bias

    # ---- multi-head self-attention (identity projections), heads batched ----
    scale = 1.0 / math.sqrt(HEAD_DIM)
    scores = jnp.einsum("hqd,hkd->hqk", xh, xh,
                        preferred_element_type=jnp.float32) * scale
    scores = scores + mask[:, None, :]        # broadcast over heads & queries
    m = jnp.max(scores, axis=-1, keepdims=True)
    p = jnp.exp(scores - m)
    denom = jnp.sum(p, axis=-1, keepdims=True)
    p = p * pl.reciprocal(denom, approx=True)
    ctx = jnp.einsum("hqk,hkd->hqd", p, xh,
                     preferred_element_type=jnp.float32)          # (NH, S, HD)

    # residual (x + attn) built in head layout, one lane-concat back to (S, H)
    resid = jnp.concatenate(
        [xh[h] + ctx[h] for h in range(NUM_HEADS)], axis=-1)      # (S, H)

    # ---- LayerNorm1 -> Linear -> GELU -> Linear -> residual -> LayerNorm2 ----
    b1 = pvec_ref[0:1, :INTERMEDIATE]
    b2 = pvec_ref[1:2, :HIDDEN]
    g1 = pvec_ref[2:3, :HIDDEN]
    be1 = pvec_ref[3:4, :HIDDEN]
    g2 = pvec_ref[4:5, :HIDDEN]
    be2 = pvec_ref[5:6, :HIDDEN]

    ln1 = _layernorm(resid, g1, be1)
    h = jnp.dot(ln1, w1_ref[...], preferred_element_type=jnp.float32) + b1
    h = 0.5 * h * (1.0 + lax.erf(h * (1.0 / math.sqrt(2.0))))     # exact GELU
    ff = jnp.dot(h, w2_ref[...], preferred_element_type=jnp.float32) + b2

    o_ref[0] = _layernorm(ln1 + ff, g2, be2).astype(o_ref.dtype)


def flash_layer(hidden_states, attention_mask, params):
    B, S, H = hidden_states.shape
    assert H == HIDDEN and S == SEQ

    # Wrapper-side layout plumbing (cheap XLA ops on tiny HBM arrays):
    #  - head-split view so the kernel never lane-slices / transposes x,
    #  - (B, 1, S) mask so the mask block keeps full last-two dims,
    #  - all six small parameter vectors packed into one (8, 128) tile.
    xh = jnp.transpose(hidden_states.reshape(B, S, NUM_HEADS, HEAD_DIM),
                       (0, 2, 1, 3))                              # (B, NH, S, HD)
    mask3 = attention_mask.reshape(B, 1, S).astype(jnp.float32)

    pvec = jnp.zeros((_PACK_ROWS, _PACK_LANES), jnp.float32)
    pvec = pvec.at[0, :INTERMEDIATE].set(params["b1"])
    pvec = pvec.at[1, :HIDDEN].set(params["b2"])
    pvec = pvec.at[2, :HIDDEN].set(params["gamma1"])
    pvec = pvec.at[3, :HIDDEN].set(params["beta1"])
    pvec = pvec.at[4, :HIDDEN].set(params["gamma2"])
    pvec = pvec.at[5, :HIDDEN].set(params["beta2"])

    def weight_spec(shape):
        return pl.BlockSpec(shape, lambda b: (0,) * len(shape))

    # NOTE: at real BERT dims (H=768, I=3072) cast w1/w2 to bf16 for the MXU
    # and budget VMEM explicitly (vmem_limit_bytes) for v7x's 64 MiB.
    return pl.pallas_call(
        flash_layer_kernel,
        out_shape=jax.ShapeDtypeStruct((B, S, H), hidden_states.dtype),
        grid=(B,),
        in_specs=[
            pl.BlockSpec((1, NUM_HEADS, S, HEAD_DIM), lambda b: (b, 0, 0, 0)),
            pl.BlockSpec((1, 1, S), lambda b: (b, 0, 0)),
            weight_spec((HIDDEN, INTERMEDIATE)),
            weight_spec((INTERMEDIATE, HIDDEN)),
            weight_spec((_PACK_ROWS, _PACK_LANES)),
        ],
        out_specs=pl.BlockSpec((1, S, H), lambda b: (b, 0, 0)),
        compiler_params=pltpu.CompilerParams(
            dimension_semantics=("parallel",)),   # batch across TCs on v7x
    )(xh, mask3, params["w1"], params["w2"], pvec)


def init_params(key):
    """Deterministic init mirroring nn.Linear's U(-1/sqrt(fan_in), 1/sqrt(fan_in))
    and nn.LayerNorm's ones/zeros. Linear weights stored transposed: (in, out)."""
    k1, k2, k3, k4 = jax.random.split(key, 4)
    bound1 = 1.0 / math.sqrt(HIDDEN)
    bound2 = 1.0 / math.sqrt(INTERMEDIATE)
    return {
        "w1": jax.random.uniform(k1, (HIDDEN, INTERMEDIATE), jnp.float32,
                                 -bound1, bound1),
        "b1": jax.random.uniform(k2, (INTERMEDIATE,), jnp.float32,
                                 -bound1, bound1),
        "w2": jax.random.uniform(k3, (INTERMEDIATE, HIDDEN), jnp.float32,
                                 -bound2, bound2),
        "b2": jax.random.uniform(k4, (HIDDEN,), jnp.float32,
                                 -bound2, bound2),
        "gamma1": jnp.ones((HIDDEN,), jnp.float32),
        "beta1": jnp.zeros((HIDDEN,), jnp.float32),
        "gamma2": jnp.ones((HIDDEN,), jnp.float32),
        "beta2": jnp.zeros((HIDDEN,), jnp.float32),
    }


if __name__ == "__main__":
    key = jax.random.PRNGKey(0)
    kx, kp = jax.random.split(key)

    hidden_states = jax.random.normal(kx, (BATCH, SEQ, HIDDEN), jnp.float32)
    # additive mask: attend to everything except the last 3 key positions of batch 1
    attention_mask = jnp.zeros((BATCH, SEQ), jnp.float32)
    attention_mask = attention_mask.at[1, -3:].set(-1e9)

    params = init_params(kp)

    out = jax.jit(flash_layer)(hidden_states, attention_mask, params)
    out = jax.block_until_ready(out)
    assert out.shape == (BATCH, SEQ, HIDDEN)
    assert bool(jnp.all(jnp.isfinite(out)))
    print("KERNEL_OK")
</pallas_src>

<mosaic_0001>
module attributes {stable_mosaic.version = 11 : i64} {
  func.func @flash_layer_kernel(%arg0: i32, %arg1: memref<1x4x16x8xf32, #tpu.memory_space<vmem>>, %arg2: memref<1x1x16xf32, #tpu.memory_space<vmem>>, %arg3: memref<32x128xf32, #tpu.memory_space<vmem>>, %arg4: memref<128x32xf32, #tpu.memory_space<vmem>>, %arg5: memref<8x128xf32, #tpu.memory_space<vmem>>, %arg6: memref<1x16x32xf32, #tpu.memory_space<vmem>>) attributes {dimension_semantics = [#tpu.dimension_semantics<parallel>], iteration_bounds = array<i64: 2>, scalar_prefetch = 0 : i64, scratch_operands = 0 : i64, tpu.core_type = #tpu.core_type<tc>, window_params = [{transform_indices = @transform_0, window_bounds = array<i64: 1, 4, 16, 8>}, {transform_indices = @transform_1, window_bounds = array<i64: 1, 1, 16>}, {pipeline_mode = #tpu.pipeline_mode<synchronous>, transform_indices = @transform_2, window_bounds = array<i64: 32, 128>}, {pipeline_mode = #tpu.pipeline_mode<synchronous>, transform_indices = @transform_3, window_bounds = array<i64: 128, 32>}, {pipeline_mode = #tpu.pipeline_mode<synchronous>, transform_indices = @transform_4, window_bounds = array<i64: 8, 128>}, {transform_indices = @transform_5, window_bounds = array<i64: 1, 16, 32>}]} {
    %c0 = arith.constant 0 : index
    %c0_0 = arith.constant 0 : index
    %c0_1 = arith.constant 0 : index
    %c0_2 = arith.constant 0 : index
    %0 = vector.load %arg1[%c0, %c0_0, %c0_1, %c0_2] : memref<1x4x16x8xf32, #tpu.memory_space<vmem>>, vector<1x4x16x8xf32>
    %1 = vector.shape_cast %0 : vector<1x4x16x8xf32> to vector<4x16x8xf32>
    %c0_3 = arith.constant 0 : index
    %c0_4 = arith.constant 0 : index
    %c0_5 = arith.constant 0 : index
    %2 = vector.load %arg2[%c0_3, %c0_4, %c0_5] : memref<1x1x16xf32, #tpu.memory_space<vmem>>, vector<1x1x16xf32>
    %3 = vector.shape_cast %2 : vector<1x1x16xf32> to vector<1x16xf32>
    "tpu.trace_start"() <{level = 10 : i32, message = "hqd,hkd->hqk"}> : () -> ()
    %cst = arith.constant dense<0.000000e+00> : vector<4x16x16xf32>
    %4 = tpu.matmul %1, %1, %cst {dimension_numbers = #tpu.dot_dimension_numbers<[2], [2], [1], [1], [0, 0, 0, 1, 1, 1], [0], [0]>} : vector<4x16x8xf32>, vector<4x16x8xf32>, vector<4x16x16xf32> -> vector<4x16x16xf32>
    "tpu.trace_stop"() : () -> ()
    %cst_6 = arith.constant 0.353553385 : f32
    %5 = vector.broadcast %cst_6 : f32 to vector<4x16x16xf32>
    %6 = arith.mulf %4, %5 : vector<4x16x16xf32>
    %7 = vector.shape_cast %3 : vector<1x16xf32> to vector<1x1x16xf32>
    %8 = vector.broadcast %7 : vector<1x1x16xf32> to vector<4x16x16xf32>
    %9 = arith.addf %6, %8 : vector<4x16x16xf32>
    %cst_7 = arith.constant dense<0xFF800000> : vector<4x16xf32>
    %10 = vector.multi_reduction <maximumf>, %9, %cst_7 [2] : vector<4x16x16xf32> to vector<4x16xf32>
    %11 = vector.shape_cast %10 : vector<4x16xf32> to vector<4x16x1xf32>
    %12 = vector.broadcast %11 : vector<4x16x1xf32> to vector<4x16x16xf32>
    %13 = arith.subf %9, %12 : vector<4x16x16xf32>
    %14 = math.exp %13 : vector<4x16x16xf32>
    %cst_8 = arith.constant dense<0.000000e+00> : vector<4x16xf32>
    %15 = vector.multi_reduction <add>, %14, %cst_8 [2] : vector<4x16x16xf32> to vector<4x16xf32>
    %16 = vector.shape_cast %15 : vector<4x16xf32> to vector<4x16x1xf32>
    %17 = tpu.reciprocal %16 {approx = true} : vector<4x16x1xf32> -> vector<4x16x1xf32>
    %18 = vector.broadcast %17 : vector<4x16x1xf32> to vector<4x16x16xf32>
    %19 = arith.mulf %14, %18 : vector<4x16x16xf32>
    "tpu.trace_start"() <{level = 10 : i32, message = "hqk,hkd->hqd"}> : () -> ()
    %cst_9 = arith.constant dense<0.000000e+00> : vector<4x16x8xf32>
    %20 = tpu.matmul %19, %1, %cst_9 {dimension_numbers = #tpu.dot_dimension_numbers<[2], [1], [1], [2], [0, 0, 0, 1, 1, 2], [0], [0]>} : vector<4x16x16xf32>, vector<4x16x8xf32>, vector<4x16x8xf32> -> vector<4x16x8xf32>
    "tpu.trace_stop"() : () -> ()
    %21 = vector.extract_strided_slice %1 {offsets = [0, 0, 0], sizes = [1, 16, 8], strides = [1, 1, 1]} : vector<4x16x8xf32> to vector<1x16x8xf32>
    %22 = vector.shape_cast %21 : vector<1x16x8xf32> to vector<16x8xf32>
    %23 = vector.extract_strided_slice %20 {offsets = [0, 0, 0], sizes = [1, 16, 8], strides = [1, 1, 1]} : vector<4x16x8xf32> to vector<1x16x8xf32>
    %24 = vector.shape_cast %23 : vector<1x16x8xf32> to vector<16x8xf32>
    %25 = arith.addf %22, %24 : vector<16x8xf32>
    %26 = vector.extract_strided_slice %1 {offsets = [1, 0, 0], sizes = [1, 16, 8], strides = [1, 1, 1]} : vector<4x16x8xf32> to vector<1x16x8xf32>
    %27 = vector.shape_cast %26 : vector<1x16x8xf32> to vector<16x8xf32>
    %28 = vector.extract_strided_slice %20 {offsets = [1, 0, 0], sizes = [1, 16, 8], strides = [1, 1, 1]} : vector<4x16x8xf32> to vector<1x16x8xf32>
    %29 = vector.shape_cast %28 : vector<1x16x8xf32> to vector<16x8xf32>
    %30 = arith.addf %27, %29 : vector<16x8xf32>
    %31 = vector.extract_strided_slice %1 {offsets = [2, 0, 0], sizes = [1, 16, 8], strides = [1, 1, 1]} : vector<4x16x8xf32> to vector<1x16x8xf32>
    %32 = vector.shape_cast %31 : vector<1x16x8xf32> to vector<16x8xf32>
    %33 = vector.extract_strided_slice %20 {offsets = [2, 0, 0], sizes = [1, 16, 8], strides = [1, 1, 1]} : vector<4x16x8xf32> to vector<1x16x8xf32>
    %34 = vector.shape_cast %33 : vector<1x16x8xf32> to vector<16x8xf32>
    %35 = arith.addf %32, %34 : vector<16x8xf32>
    %36 = vector.extract_strided_slice %1 {offsets = [3, 0, 0], sizes = [1, 16, 8], strides = [1, 1, 1]} : vector<4x16x8xf32> to vector<1x16x8xf32>
    %37 = vector.shape_cast %36 : vector<1x16x8xf32> to vector<16x8xf32>
    %38 = vector.extract_strided_slice %20 {offsets = [3, 0, 0], sizes = [1, 16, 8], strides = [1, 1, 1]} : vector<4x16x8xf32> to vector<1x16x8xf32>
    %39 = vector.shape_cast %38 : vector<1x16x8xf32> to vector<16x8xf32>
    %40 = arith.addf %37, %39 : vector<16x8xf32>
    %41 = tpu.concatenate %25, %30, %35, %40 in 1 : vector<16x8xf32>, vector<16x8xf32>, vector<16x8xf32>, vector<16x8xf32> -> vector<16x32xf32>
    %c0_10 = arith.constant 0 : index
    %c0_11 = arith.constant 0 : index
    %42 = vector.load %arg5[%c0_10, %c0_11] : memref<8x128xf32, #tpu.memory_space<vmem>>, vector<1x128xf32>
    %c1 = arith.constant 1 : index
    %c0_12 = arith.constant 0 : index
    %43 = vector.load %arg5[%c1, %c0_12] : memref<8x128xf32, #tpu.memory_space<vmem>>, vector<1x32xf32>
    %c2 = arith.constant 2 : index
    %c0_13 = arith.constant 0 : index
    %44 = vector.load %arg5[%c2, %c0_13] : memref<8x128xf32, #tpu.memory_space<vmem>>, vector<1x32xf32>
    %c3 = arith.constant 3 : index
    %c0_14 = arith.constant 0 : index
    %45 = vector.load %arg5[%c3, %c0_14] : memref<8x128xf32, #tpu.memory_space<vmem>>, vector<1x32xf32>
    %c4 = arith.constant 4 : index
    %c0_15 = arith.constant 0 : index
    %46 = vector.load %arg5[%c4, %c0_15] : memref<8x128xf32, #tpu.memory_space<vmem>>, vector<1x32xf32>
    %c5 = arith.constant 5 : index
    %c0_16 = arith.constant 0 : index
    %47 = vector.load %arg5[%c5, %c0_16] : memref<8x128xf32, #tpu.memory_space<vmem>>, vector<1x32xf32>
    %cst_17 = arith.constant dense<0.000000e+00> : vector<16xf32>
    %48 = vector.multi_reduction <add>, %41, %cst_17 [1] : vector<16x32xf32> to vector<16xf32>
    %49 = vector.shape_cast %48 : vector<16xf32> to vector<16x1xf32>
    %cst_18 = arith.constant 3.200000e+01 : f32
    %50 = vector.broadcast %cst_18 : f32 to vector<16x1xf32>
    %51 = arith.divf %49, %50 : vector<16x1xf32>
    %52 = vector.broadcast %51 : vector<16x1xf32> to vector<16x32xf32>
    %53 = arith.subf %41, %52 : vector<16x32xf32>
    %54 = arith.mulf %53, %53 : vector<16x32xf32>
    %cst_19 = arith.constant dense<0.000000e+00> : vector<16xf32>
    %55 = vector.multi_reduction <add>, %54, %cst_19 [1] : vector<16x32xf32> to vector<16xf32>
    %56 = vector.shape_cast %55 : vector<16xf32> to vector<16x1xf32>
    %cst_20 = arith.constant 3.200000e+01 : f32
    %57 = vector.broadcast %cst_20 : f32 to vector<16x1xf32>
    %58 = arith.divf %56, %57 : vector<16x1xf32>
    %59 = vector.broadcast %51 : vector<16x1xf32> to vector<16x32xf32>
    %60 = arith.subf %41, %59 : vector<16x32xf32>
    %cst_21 = arith.constant 9.99999974E-6 : f32
    %61 = vector.broadcast %cst_21 : f32 to vector<16x1xf32>
    %62 = arith.addf %58, %61 : vector<16x1xf32>
    %63 = math.rsqrt %62 : vector<16x1xf32>
    %64 = vector.broadcast %63 : vector<16x1xf32> to vector<16x32xf32>
    %65 = arith.mulf %60, %64 : vector<16x32xf32>
    %66 = vector.broadcast %44 : vector<1x32xf32> to vector<16x32xf32>
    %67 = arith.mulf %65, %66 : vector<16x32xf32>
    %68 = vector.broadcast %45 : vector<1x32xf32> to vector<16x32xf32>
    %69 = arith.addf %67, %68 : vector<16x32xf32>
    %c0_22 = arith.constant 0 : index
    %c0_23 = arith.constant 0 : index
    %70 = vector.load %arg3[%c0_22, %c0_23] : memref<32x128xf32, #tpu.memory_space<vmem>>, vector<32x128xf32>
    %cst_24 = arith.constant dense<0.000000e+00> : vector<16x128xf32>
    %71 = tpu.matmul %69, %70, %cst_24 {dimension_numbers = #tpu.dot_dimension_numbers<[1], [0], [0], [1], [0, 0, 1, 1], [], []>} : vector<16x32xf32>, vector<32x128xf32>, vector<16x128xf32> -> vector<16x128xf32>
    %72 = vector.broadcast %42 : vector<1x128xf32> to vector<16x128xf32>
    %73 = arith.addf %71, %72 : vector<16x128xf32>
    %cst_25 = arith.constant 5.000000e-01 : f32
    %74 = vector.broadcast %cst_25 : f32 to vector<16x128xf32>
    %75 = arith.mulf %74, %73 : vector<16x128xf32>
    %cst_26 = arith.constant 0.707106769 : f32
    %76 = vector.broadcast %cst_26 : f32 to vector<16x128xf32>
    %77 = arith.mulf %73, %76 : vector<16x128xf32>
    %78 = math.erf %77 : vector<16x128xf32>
    %cst_27 = arith.constant 1.000000e+00 : f32
    %79 = vector.broadcast %cst_27 : f32 to vector<16x128xf32>
    %80 = arith.addf %79, %78 : vector<16x128xf32>
    %81 = arith.mulf %75, %80 : vector<16x128xf32>
    %c0_28 = arith.constant 0 : index
    %c0_29 = arith.constant 0 : index
    %82 = vector.load %arg4[%c0_28, %c0_29] : memref<128x32xf32, #tpu.memory_space<vmem>>, vector<128x32xf32>
    %cst_30 = arith.constant dense<0.000000e+00> : vector<16x32xf32>
    %83 = tpu.matmul %81, %82, %cst_30 {dimension_numbers = #tpu.dot_dimension_numbers<[1], [0], [0], [1], [0, 0, 1, 1], [], []>} : vector<16x128xf32>, vector<128x32xf32>, vector<16x32xf32> -> vector<16x32xf32>
    %84 = vector.broadcast %43 : vector<1x32xf32> to vector<16x32xf32>
    %85 = arith.addf %83, %84 : vector<16x32xf32>
    %86 = arith.addf %69, %85 : vector<16x32xf32>
    %cst_31 = arith.constant dense<0.000000e+00> : vector<16xf32>
    %87 = vector.multi_reduction <add>, %86, %cst_31 [1] : vector<16x32xf32> to vector<16xf32>
    %88 = vector.shape_cast %87 : vector<16xf32> to vector<16x1xf32>
    %cst_32 = arith.constant 3.200000e+01 : f32
    %89 = vector.broadcast %cst_32 : f32 to vector<16x1xf32>
    %90 = arith.divf %88, %89 : vector<16x1xf32>
    %91 = vector.broadcast %90 : vector<16x1xf32> to vector<16x32xf32>
    %92 = arith.subf %86, %91 : vector<16x32xf32>
    %93 = arith.mulf %92, %92 : vector<16x32xf32>
    %cst_33 = arith.constant dense<0.000000e+00> : vector<16xf32>
    %94 = vector.multi_reduction <add>, %93, %cst_33 [1] : vector<16x32xf32> to vector<16xf32>
    %95 = vector.shape_cast %94 : vector<16xf32> to vector<16x1xf32>
    %cst_34 = arith.constant 3.200000e+01 : f32
    %96 = vector.broadcast %cst_34 : f32 to vector<16x1xf32>
    %97 = arith.divf %95, %96 : vector<16x1xf32>
    %98 = vector.broadcast %90 : vector<16x1xf32> to vector<16x32xf32>
    %99 = arith.subf %86, %98 : vector<16x32xf32>
    %cst_35 = arith.constant 9.99999974E-6 : f32
    %100 = vector.broadcast %cst_35 : f32 to vector<16x1xf32>
    %101 = arith.addf %97, %100 : vector<16x1xf32>
    %102 = math.rsqrt %101 : vector<16x1xf32>
    %103 = vector.broadcast %102 : vector<16x1xf32> to vector<16x32xf32>
    %104 = arith.mulf %99, %103 : vector<16x32xf32>
    %105 = vector.broadcast %46 : vector<1x32xf32> to vector<16x32xf32>
    %106 = arith.mulf %104, %105 : vector<16x32xf32>
    %107 = vector.broadcast %47 : vector<1x32xf32> to vector<16x32xf32>
    %108 = arith.addf %106, %107 : vector<16x32xf32>
    %c0_36 = arith.constant 0 : index
    %c0_37 = arith.constant 0 : index
    %c0_38 = arith.constant 0 : index
    %109 = vector.load %arg6[%c0_36, %c0_37, %c0_38] : memref<1x16x32xf32, #tpu.memory_space<vmem>>, vector<1x16x32xf32>
    %110 = vector.shape_cast %109 : vector<1x16x32xf32> to vector<16x32xf32>
    %111 = vector.shape_cast %108 : vector<16x32xf32> to vector<1x16x32xf32>
    tpu.vector_store %arg6[%c0_36, %c0_37, %c0_38], %111 {strides = array<i32>} : memref<1x16x32xf32, #tpu.memory_space<vmem>>, vector<1x16x32xf32>,
    return
  }
  func.func @transform_0(%arg0: i32) -> (i32, i32, i32, i32) {
    %c0_i32 = arith.constant 0 : i32
    %c0_i32_0 = arith.constant 0 : i32
    %c0_i32_1 = arith.constant 0 : i32
    %c0_i32_2 = arith.constant 0 : i32
    return %arg0, %c0_i32, %c0_i32_0, %c0_i32_1 : i32, i32, i32, i32
  }
  func.func @transform_1(%arg0: i32) -> (i32, i32, i32) {
    %c0_i32 = arith.constant 0 : i32
    %c0_i32_0 = arith.constant 0 : i32
    %c0_i32_1 = arith.constant 0 : i32
    return %arg0, %c0_i32, %c0_i32_0 : i32, i32, i32
  }
  func.func @transform_2(%arg0: i32) -> (i32, i32) {
    %c0_i32 = arith.constant 0 : i32
    %c0_i32_0 = arith.constant 0 : i32
    %c0_i32_1 = arith.constant 0 : i32
    return %c0_i32, %c0_i32_0 : i32, i32
  }
  func.func @transform_3(%arg0: i32) -> (i32, i32) {
    %c0_i32 = arith.constant 0 : i32
    %c0_i32_0 = arith.constant 0 : i32
    %c0_i32_1 = arith.constant 0 : i32
    return %c0_i32, %c0_i32_0 : i32, i32
  }
  func.func @transform_4(%arg0: i32) -> (i32, i32) {
    %c0_i32 = arith.constant 0 : i32
    %c0_i32_0 = arith.constant 0 : i32
    %c0_i32_1 = arith.constant 0 : i32
    return %c0_i32, %c0_i32_0 : i32, i32
  }
  func.func @transform_5(%arg0: i32) -> (i32, i32, i32) {
    %c0_i32 = arith.constant 0 : i32
    %c0_i32_0 = arith.constant 0 : i32
    %c0_i32_1 = arith.constant 0 : i32
    return %arg0, %c0_i32, %c0_i32_0 : i32, i32, i32
  }
}

</mosaic_0001>

<bundles_post_ra>
// kernel: flash_layer.1
= control target key start
LH: loop header
LB: loop body
LE: loop exit
PB: predicated region body
PF: predicated region fallthrough
CT: control target
= control target key end

     0   :  { %10 = vsyncpa [#allocation3], 0  ;;  %s2196_s0 = inlined_call_operand.vmem [shape: f32[2,4,16,8], index: 0, kind: input, shape index: {}]   ;;  %s2197_s1 = inlined_call_operand.vmem [shape: f32[2,1,16], index: 1, kind: input, shape index: {}]   ;;  %s2198_s2 = inlined_call_operand.vmem [shape: f32[32,128], index: 2, kind: input, shape index: {}]   ;;  %s2199_s3 = inlined_call_operand.vmem [shape: f32[128,32], index: 3, kind: input, shape index: {}]   ;;  %s2200_s4 = inlined_call_operand.vmem [shape: f32[8,128], index: 4, kind: input, shape index: {}]   ;;  %s2201_s5 = inlined_call_operand.hbm [shape: f32[2,16,32], index: 5, kind: output, shape index: {}]  }
   0x1   :  { %12 = vsyncpa [#allocation3 + $0x1], 0  ;;  %s1883_s18 = smov 0   ;;  %s1885_s19 = smov 0  }
   0x2   :  { %s1887_s20 = smov 0   ;;  %s1889_s21 = smov 0  }
   0x3 LB: > { %s1904_s22 = sadd.s32 4294967295, %s1846_s21   ;;  %s1412_s23 = sadd.s32 4294967294, %s1846_s21   ;;  %s1846_s21 = sphi %s1889_s21, %s2209_s21   ;;  %s1842_s20 = sphi %s1887_s20, %s2208_s20   ;;  %s1838_s19 = sphi %s1885_s19, %s2207_s19   ;;  %s1834_s18 = sphi %s1883_s18, %s2206_s18  }
   0x4   : > { %s1908_s24 = sadd.s32 1, %s1846_s21   ;;  %s140_s25 = sadd.s32 1, %s1842_s20 }
   0x5   : > { %s137_s26 = ssub.s32 %s1846_s21, %s1908_s24  ;;  %p150_p0 = scmp.ne.s32.totalorder %s1842_s20, %s1838_s19 }
   0x6   : > { %p138_p1 = scmp.eq.s32.totalorder %s137_s26, 0  ;;  %p151_p2 = scmp.eq.s32.totalorder %s1904_s22, 1 }
   0x7   : > { %p156_p3 = scmp.ne.s32.totalorder %s1838_s19, %s1834_s18  ;;  %p157_p4 = scmp.eq.s32.totalorder %s1412_s23, 1 }
   0x8   : > { %s1919_s27 = scalar_select %p138_p1, %s1842_s20, %s140_s25  }
   0x9   : > { %p1921_p5 = por %p151_p2, %p150_p0  ;;  %p1925_p6 = por %p157_p4, %p156_p3 }
   0xa   : > { %p1415_p7 = scmp.ge.s32.totalorder %s1846_s21, 1  ;;  %p198_p8 = scmp.lt.s32.totalorder %s1846_s21, 3 }
   0xc   : > { %p199_p9 = pnand %p1415_p7, %p198_p8 }
   0xd   : > { %p229_p10 = scmp.lt.s32.totalorder (!%p199_p9), %s1904_s22, 1  ;;  %vm246_vm0 = vcmask (!%p199_p9), 64512   ;;  %vm593_vm2 = vcmask (!%p199_p9), 130048   ;;  %s1848_s13 = smov (!%p199_p9), 8   ;;  %vm1042_vm3 = vcmask (!%p199_p9), 195584   ;;  %vm1051_vm4 = vcmask (!%p199_p9), 261120  }
   0xe   : > { %202 = sbr.rel (%p199_p9) target bundleno = 2014 (0x7de), region = 40  ;;  %vm1941_vm1 = vmpackc.low (!%p199_p9), %vm246_vm0, %vm246_vm0  ;;  %s1849_s14 = smov (!%p199_p9), 16  }
   0xf   : > { %s1850_s15 = smov (!%p199_p9), 24   ;;  %s226_s25 = sand.u32 (!%p199_p9), 1, %s1838_s19  }
  0x10   : > { %s1416_s26 = sshll.u32 (!%p199_p9), %s226_s25, 4  ;;  %s1851_s17 = smov (!%p199_p9), [#allocation2]  }
  0x11   : > { %s228_s10 = scalar_lea.vmem (!%p199_p9), [#allocation2], %s1416_s26  ;;  %s1788_s23 = sshll.u32 (!%p199_p9), %s1851_s17, 4  ;;  %s1789_s23 = int_to_ptr.vmem [resolvable:$false] %s1788_s23 }
  0x12   : > { %s1341_s11 = sshll.u32 (!%p199_p9), %s228_s10, 4  ;;  %s1790_s26 = scalar_lea.vmem (!%p199_p9), %s1789_s23, 512  ;;  %s2150_s11 = int_to_ptr.vmem [resolvable:$true] %s1341_s11 }
  0x13   : > { %s1784_s16 = scalar_lea.vmem (!%p199_p9), %s2150_s11, 256  ;;  %p1791_p0 = scmp.lt.s32.totalorder (!%p199_p9), %s2150_s11, %s1789_s23 }
  0x14   : > { %p1785_p11 = scmp.ne.s32.totalorder (!%p199_p9), %s2150_s11, %s1784_s16  ;;  %p1792_p1 = scmp.lt.s32.totalorder (!%p199_p9), %s1790_s26, %s1784_s16 }
  0x15   : > { %s1933_s30 = scalar_select %p229_p10, %s1904_s22, 1 }
  0x16   : > { %p1786_p12 = pnand %p1785_p11, %p1921_p5  ;;  %p1793_p2 = por %p1792_p1, %p1791_p0 }
  0x17   : > { %s1457_s6 = sshll.u32 %s1933_s30, 6  ;;  %s236_s12 = scalar_lea.vmem %s2197_s1, %s1933_s30 }
  0x18   : > { %s233_s9 = scalar_lea.vmem %s2196_s0, %s1457_s6  ;;  %v1435_v15 = vld [vmem:[%s236_s12] ss:$0 sm:$0xff]  ;;  %p1787_p13 = pneg %p1786_p12 }
  0x19   : > { %v1945_v1 = vld [vmem:[%s233_s9] sm:$0xff]  ;;  %v1947_v2 = vld [vmem:[%s233_s9 + $0x8] sm:$0xff]  ;;  %v1949_v3 = vld [vmem:[%s233_s9 + $0x10] sm:$0xff] }
  0x1a   : > { %v1617_v4 = vpack.c.bf16 %v1947_v2, %v1945_v1  ;;  %1519 = vmatprep.mubr.msk.f32.mxu0 %vm246_vm0, %v1945_v1  ;;  %v1955_v5 = vld [vmem:[%s233_s9 + $0x18] sm:$0xff]  ;;  %v1961_v7 = vld [vmem:[%s233_s9 + $0x30] sm:$0xff]  ;;  %v1978_v10 = vld [vmem:[%s233_s9 + $0x20] sm:$0xff]  ;;  %p1794_p3 = pnand %p1793_p2, %p1787_p13 }
  0x1b   : > { %v1959_v6 = vpack.c.bf16 %v1955_v5, %v1949_v3  ;;  %v1963_v8 = vld [vmem:[%s233_s9 + $0x38] sm:$0xff]  ;;  %1540 = vmatprep.mubr.msk.f32.mxu1 %vm246_vm0, %v1961_v7  ;;  %v1980_v11 = vld [vmem:[%s233_s9 + $0x28] sm:$0xff]  ;;  %s1458_s9 = sshll.u32 %s1904_s22, 8  ;;  %s2154_s22 = scalar_lea.sflag [#allocation3], %s226_s25 }
  0x1c   : > { %1619 = vmatprep.subr.msk.bf16.mxu0 %vm1941_vm1, %v1617_v4  ;;  %v1635_v9 = vpack.c.bf16 %v1963_v8, %v1961_v7  ;;  %v1986_v12 = vpack.c.bf16 %v1980_v11, %v1978_v10 }
  0x1d   : > { %1622 = vmatpush3.bf16.xpose.msk.msra.mxu0 %vm1941_vm1, %v1617_v4 }
  0x1e   : > { %1625 = vmatprep.subr.msk.bf16.mxu0 %vm1941_vm1, %v1959_v6  ;;  %1637 = vmatprep.subr.msk.bf16.mxu1 %vm1941_vm1, %v1635_v9 }
  0x1f   : > { %1640 = vmatpush3.bf16.xpose.msk.msra.mxu1 %vm1941_vm1, %v1635_v9 }
  0x20   : > { %1654 = vmatprep.subr.bf16.mxu1 %v1635_v9 }
  0x24   : > { %1520 = vmatmul.mubr.msk.f32.vlgmr.msra.gmra.mrb[0].mxu0 %vm246_vm0, %v1947_v2 }
  0x25   : > { %1628 = vmatpush3.bf16.xpose.msk.msra.mxu0 %vm1941_vm1, %v1959_v6  ;;  %1526 = vmatprep.mubr.msk.f32.mxu0 %vm246_vm0, %v1949_v3 }
  0x26   : > { %1631 = vmatprep.subr.msk.bf16.mxu0 %vm1941_vm1, %v1986_v12  ;;  %1541 = vmatmul.mubr.msk.f32.vlgmr.msra.gmra.mrb[0].mxu1 %vm246_vm0, %v1963_v8 }
  0x27   : > { %1656 = vmatpush3.bf16.msra.mxu1 %v1635_v9 }
  0x2c   : > { %1527 = vmatmul.mubr.msk.f32.vlgmr.msra.gmra.mrb[2].mxu0 %vm246_vm0, %v1955_v5 }
  0x2d   : > { %1634 = vmatpush3.bf16.xpose.msk.msra.mxu0 %vm1941_vm1, %v1986_v12  ;;  %1533 = vmatprep.mubr.msk.f32.mxu0 %vm246_vm0, %v1978_v10 }
  0x2e   : > { %1642 = vmatprep.subr.bf16.mxu0 %v1617_v4 }
  0x34   : > { %1534 = vmatmul.mubr.msk.f32.vlgmr.msra.gmra.mrb[4].mxu0 %vm246_vm0, %v1980_v11 }
  0x35   : > { %1644 = vmatpush3.bf16.msra.mxu0 %v1617_v4 }
  0x36   : > { %1646 = vmatprep.subr.bf16.mxu0 %v1959_v6 }
  0xf7   : > { %v1521_v13 = vpop.f32.mrb[0].mxu0 }
  0xf8   : > { %v319_v14 = vpop.f32.mrb[1].mxu0  ;;  %v572_v16 = vmul.f32 0.35355338, %v1521_v13 }
  0xf9   : > { %v571_v17 = vmul.f32 0.35355338, %v319_v14  ;;  %v1542_v18 = vpop.f32.mrb[0].mxu1 }
  0xfa   : > { %v562_v19 = vpop.f32.mrb[1].mxu1  ;;  %v586_v22 = vadd.f32 %v1435_v15, %v572_v16  ;;  %v578_v31 = vmul.f32 0.35355338, %v1542_v18 }
  0xfb   : > { %v585_v20 = vadd.f32 %v1435_v15, %v571_v17  ;;  %v577_v33 = vmul.f32 0.35355338, %v562_v19 }
  0xfc   : > { %v597_v27 = vsel %vm593_vm2, %v586_v22, -inf  ;;  %v592_v39 = vadd.f32 %v1435_v15, %v578_v31 }
  0xfd   : > { %v594_v21 = vsel %vm593_vm2, %v585_v20, -inf  ;;  %v591_v41 = vadd.f32 %v1435_v15, %v577_v33 }
  0xfe   : > { %595 = vmax.xlane.f32.xlu0 %v594_v21  ;;  %v615_v44 = vsel %vm593_vm2, %v592_v39, -inf }
  0xff   : > { %v1528_v23 = vpop.f32.mrb[2].mxu0  ;;  %v612_v45 = vsel %vm593_vm2, %v591_v41, -inf }
 0x100   : > { %v574_v24 = vmul.f32 0.35355338, %v1528_v23  ;;  %v400_v25 = vpop.f32.mrb[3].mxu0 }
 0x101   : > { %v573_v26 = vmul.f32 0.35355338, %v400_v25 }
 0x102   : > { %598 = vmax.xlane.f32.xlu0 %v597_v27  ;;  %v588_v28 = vadd.f32 %v1435_v15, %v574_v24 }
 0x103   : > { %v587_v30 = vadd.f32 %v1435_v15, %v573_v26 }
 0x104   : > { %v603_v29 = vsel %vm593_vm2, %v588_v28, -inf }
 0x105   : > { %604 = vmax.xlane.f32.xlu1 %v603_v29  ;;  %v600_v36 = vsel %vm593_vm2, %v587_v30, -inf }
 0x107   : > { %v1535_v32 = vpop.f32.mrb[4].mxu0 }
 0x108   : > { %v576_v34 = vmul.f32 0.35355338, %v1535_v32  ;;  %v481_v35 = vpop.f32.mrb[5].mxu0 }
 0x109   : > { %v575_v37 = vmul.f32 0.35355338, %v481_v35  ;;  %601 = vmax.xlane.f32.xlu1 %v600_v36 }
 0x10a   : > { %v590_v38 = vadd.f32 %v1435_v15, %v576_v34 }
 0x10b   : > { %v589_v40 = vadd.f32 %v1435_v15, %v575_v37 }
 0x10c   : > { %v609_v42 = vsel %vm593_vm2, %v590_v38, -inf }
 0x10d   : > { %610 = vmax.xlane.f32.xlu1 %v609_v42  ;;  %v606_v43 = vsel %vm593_vm2, %v589_v40, -inf }
 0x10e   : > { %607 = vmax.xlane.f32.xlu0 %v606_v43 }
 0x111   : > { %616 = vmax.xlane.f32.xlu1 %v615_v44 }
 0x112   : > { %613 = vmax.xlane.f32.xlu0 %v612_v45 }
 0x18b   : > { %v596_v46 = vpop.xlane.xlu0 %595 }
 0x18c   : > { %v618_v47 = vsub.f32 %v585_v20, %v596_v46 }
 0x18e   : > { %v626_v48 = vmul.f32 1.442695, %v618_v47 }
 0x18f   : > { %v599_v49 = vpop.xlane.xlu0 %598 }
 0x190   : > { %1740 = vpow2.f32 %v626_v48  ;;  %v619_v50 = vsub.f32 %v586_v22, %v599_v49 }
 0x192   : > { %v628_v51 = vmul.f32 1.442695, %v619_v50  ;;  %v605_v52 = vpop.xlane.xlu1 %604 }
 0x193   : > { %v621_v53 = vsub.f32 %v588_v28, %v605_v52 }
 0x194   : > { %1742 = vpow2.f32 %v628_v51 }
 0x195   : > { %v632_v54 = vmul.f32 1.442695, %v621_v53 }
 0x196   : > { %v602_v55 = vpop.xlane.xlu1 %601 }
 0x197   : > { %1744 = vpow2.f32 %v632_v54  ;;  %v620_v56 = vsub.f32 %v587_v30, %v602_v55 }
 0x199   : > { %v630_v57 = vmul.f32 1.442695, %v620_v56 }
 0x19a   : > { %v1741_v58 = vpop.eup %1740  ;;  %v611_v59 = vpop.xlane.xlu1 %610 }
 0x19b   : > { %1746 = vpow2.f32 %v630_v57  ;;  %v623_v60 = vsub.f32 %v590_v38, %v611_v59  ;;  %v608_v61 = vpop.xlane.xlu0 %607  ;;  %v642_v62 = vsel %vm593_vm2, %v1741_v58, 0.0 }
 0x19c   : > { %v622_v63 = vsub.f32 %v589_v40, %v608_v61  ;;  %643 = vadd.xlane.f32.xlu0 %v642_v62 }
 0x19d   : > { %v636_v0 = vmul.f32 1.442695, %v623_v60 }
 0x19e   : > { %v1743_v4 = vpop.eup %1742  ;;  %v634_v9 = vmul.f32 1.442695, %v622_v63  ;;  %v617_v13 = vpop.xlane.xlu1 %616 }
 0x19f   : > { %1748 = vpow2.f32 %v636_v0  ;;  %v625_v14 = vsub.f32 %v592_v39, %v617_v13  ;;  %v614_v15 = vpop.xlane.xlu0 %613  ;;  %v645_v16 = vsel %vm593_vm2, %v1743_v4, 0.0 }
 0x1a0   : > { %1750 = vpow2.f32 %v634_v9  ;;  %v624_v17 = vsub.f32 %v591_v41, %v614_v15  ;;  %646 = vadd.xlane.f32.xlu1 %v645_v16 }
 0x1a1   : > { %v1745_v18 = vpop.eup %1744  ;;  %v640_v19 = vmul.f32 1.442695, %v625_v14 }
 0x1a2   : > { %v638_v20 = vmul.f32 1.442695, %v624_v17  ;;  %v651_v21 = vsel %vm593_vm2, %v1745_v18, 0.0 }
 0x1a3   : > { %1752 = vpow2.f32 %v640_v19 }
 0x1a4   : > { %1754 = vpow2.f32 %v638_v20  ;;  %652 = vadd.xlane.f32.xlu1 %v651_v21 }
 0x1a5   : > { %v1747_v22 = vpop.eup %1746 }
 0x1a6   : > { %v648_v23 = vsel %vm593_vm2, %v1747_v22, 0.0 }
 0x1a7   : > { %649 = vadd.xlane.f32.xlu0 %v648_v23 }
 0x1a9   : > { %v1749_v24 = vpop.eup %1748 }
 0x1aa   : > { %v1751_v25 = vpop.eup %1750  ;;  %v657_v26 = vsel %vm593_vm2, %v1749_v24, 0.0 }
 0x1ab   : > { %658 = vadd.xlane.f32.xlu1 %v657_v26  ;;  %v654_v27 = vsel %vm593_vm2, %v1751_v25, 0.0 }
 0x1ac   : > { %655 = vadd.xlane.f32.xlu0 %v654_v27 }
 0x1ad   : > { %v1753_v28 = vpop.eup %1752 }
 0x1ae   : > { %v1755_v29 = vpop.eup %1754  ;;  %v663_v30 = vsel %vm593_vm2, %v1753_v28, 0.0 }
 0x1af   : > { %664 = vadd.xlane.f32.xlu1 %v663_v30  ;;  %v660_v31 = vsel %vm593_vm2, %v1755_v29, 0.0 }
 0x1b0   : > { %661 = vadd.xlane.f32.xlu0 %v660_v31 }
 0x229   : > { %v644_v32 = vpop.xlane.xlu0 %643 }
 0x22a   : > { %1756 = vrcp.f32 %v644_v32  ;;  %v1091_v32 = vld [vmem:[%s2198_s2] sm:$0xff] }
 0x22d   : > { %v647_v33 = vpop.xlane.xlu1 %646 }
 0x22e   : > { %1758 = vrcp.f32 %v647_v33  ;;  %v1092_v33 = vld [vmem:[%s2198_s2 + $0x8] sm:$0xff] }
 0x231   : > { %v653_v34 = vpop.xlane.xlu1 %652 }
 0x232   : > { %1760 = vrcp.f32 %v653_v34  ;;  %v1657_v34 = vpack.c.bf16 %v1092_v33, %v1091_v32 }
 0x234   : > { %v1757_v35 = vpop.eup %1756  ;;  %v650_v36 = vpop.xlane.xlu0 %649 }
 0x235   : > { %1762 = vrcp.f32 %v650_v36  ;;  %v674_v37 = vmul.f32 %v1757_v35, %v1741_v58  ;;  %v1093_v35 = vld [vmem:[%s2198_s2 + $0x10] sm:$0xff]  ;;  %v1094_v36 = vld [vmem:[%s2198_s2 + $0x18] sm:$0xff] }
 0x237   : > { %1547 = vmatprep.mubr.msk.f32.mxu0 %vm593_vm2, %v674_v37  ;;  %v1661_v37 = vpack.c.bf16 %v1094_v36, %v1093_v35 }
 0x238   : > { %v1759_v38 = vpop.eup %1758  ;;  %v659_v39 = vpop.xlane.xlu1 %658 }
 0x239   : > { %v675_v40 = vmul.f32 %v1759_v38, %v1743_v4  ;;  %1764 = vrcp.f32 %v659_v39  ;;  %v656_v41 = vpop.xlane.xlu0 %655  ;;  %v1190_v38 = vld [vmem:[%s2199_s3] sm:$0xff]  ;;  %v1191_v39 = vld [vmem:[%s2199_s3 + $0x8] sm:$0xff] }
 0x23a   : > { %1766 = vrcp.f32 %v656_v41  ;;  %v1665_v41 = vpack.c.bf16 %v1191_v39, %v1190_v38 }
 0x23b   : > { %1548 = vmatmul.mubr.msk.f32.vlgmr.msra.gmra.mrb[6].mxu0 %vm593_vm2, %v675_v40  ;;  %v1192_v40 = vld [vmem:[%s2199_s3 + $0x10] sm:$0xff] }
 0x23c   : > { %v665_v42 = vpop.xlane.xlu1 %664  ;;  %1648 = vmatpush3.bf16.msra.mxu0 %v1959_v6  ;;  %v1761_v44 = vpop.eup %1760  ;;  %1666 = vmatprep.subr.bf16.mxu1 %v1665_v41 }
 0x23d   : > { %1768 = vrcp.f32 %v665_v42  ;;  %v662_v43 = vpop.xlane.xlu0 %661  ;;  %1650 = vmatprep.subr.bf16.mxu0 %v1986_v12  ;;  %v677_v47 = vmul.f32 %v1761_v44, %v1745_v18  ;;  %v1193_v42 = vld [vmem:[%s2199_s3 + $0x18] sm:$0xff]  ;;  %v1194_v44 = vld [vmem:[%s2199_s3 + $0x20] sm:$0xff] }
 0x23e   : > { %1770 = vrcp.f32 %v662_v43  ;;  %v1669_v43 = vpack.c.bf16 %v1193_v42, %v1192_v40 }
 0x23f   : > { %v1763_v45 = vpop.eup %1762 }
 0x240   : > { %v676_v46 = vmul.f32 %v1763_v45, %v1747_v22  ;;  %v1195_v45 = vld [vmem:[%s2199_s3 + $0x28] sm:$0xff] }
 0x242   : > { %1554 = vmatprep.mubr.msk.f32.mxu0 %vm593_vm2, %v676_v46  ;;  %v1673_v46 = vpack.c.bf16 %v1195_v45, %v1194_v44 }
 0x243   : > { %v1765_v48 = vpop.eup %1764  ;;  %1555 = vmatmul.mubr.msk.f32.vlgmr.msra.gmra.mrb[8].mxu0 %vm593_vm2, %v677_v47 }
 0x244   : > { %v1767_v49 = vpop.eup %1766  ;;  %1652 = vmatpush3.bf16.msra.mxu0 %v1986_v12  ;;  %v679_v51 = vmul.f32 %v1765_v48, %v1749_v24 }
 0x245   : > { %v678_v50 = vmul.f32 %v1767_v49, %v1751_v25  ;;  %1658 = vmatprep.subr.bf16.mxu0 %v1657_v34 }
 0x247   : > { %v1769_v6 = vpop.eup %1768  ;;  %1561 = vmatprep.mubr.msk.f32.mxu0 %vm593_vm2, %v678_v50 }
 0x248   : > { %v1771_v52 = vpop.eup %1770  ;;  %1562 = vmatmul.mubr.msk.f32.vlgmr.msra.gmra.mrb[10].mxu0 %vm593_vm2, %v679_v51  ;;  %v681_v54 = vmul.f32 %v1769_v6, %v1753_v28 }
 0x249   : > { %v680_v53 = vmul.f32 %v1771_v52, %v1755_v29  ;;  %1660 = vmatpush3.bf16.msra.mxu0 %v1657_v34 }
 0x24a   : > { %1662 = vmatprep.subr.bf16.mxu0 %v1661_v37 }
 0x24b   : > { %1568 = vmatprep.mubr.msk.f32.mxu1 %vm593_vm2, %v680_v53  ;;  %v1444_v53 = vld [vmem:[%s2200_s4 + $0x2] ss:$0 sm:$0xff] }
 0x24c   : > { %1569 = vmatmul.mubr.msk.f32.vlgmr.msra.gmra.mrb[2].mxu1 %vm593_vm2, %v681_v54 }
 0x24d   : > { %1664 = vmatpush3.bf16.msra.mxu0 %v1661_v37  ;;  %1668 = vmatpush3.bf16.msra.mxu1 %v1665_v41 }
 0x24e   : > { %1670 = vmatprep.subr.bf16.mxu1 %v1669_v43 }
 0x251   : > { %1672 = vmatpush3.bf16.msra.mxu1 %v1669_v43 }
 0x252   : > { %1674 = vmatprep.subr.bf16.mxu1 %v1673_v46 }
 0x255   : > { %1676 = vmatpush3.bf16.msra.mxu1 %v1673_v46 }
 0x30e   : > { %v1549_v55 = vpop.f32.mrb[6].mxu0 }
 0x30f   : > { %v754_v56 = vpop.f32.mrb[7].mxu0 }
 0x316   : > { %v1556_v57 = vpop.f32.mrb[8].mxu0 }
 0x317   : > { %v1009_v58 = vadd.f32 %v1556_v57, %v1955_v5  ;;  %v835_v12 = vpop.f32.mrb[9].mxu0 }
 0x318   : > { %v1008_v59 = vadd.f32 %v835_v12, %v1949_v3 }
 0x319   : > { %1018 = vrot.lane.b32.xlu1 %v1009_v58, %s1848_s13 }
 0x31a   : > { %1016 = vrot.lane.b32.xlu0 %v1008_v59, %s1848_s13 }
 0x31b   : > { %v1563_v60 = vpop.f32.mrb[10].mxu0 }
 0x31c   : > { %v1011_v61 = vadd.f32 %v1563_v60, %v1980_v11  ;;  %v916_v62 = vpop.f32.mrb[11].mxu0  ;;  %v1006_v11 = vadd.f32 %v754_v56, %v1945_v1 }
 0x31d   : > { %v1010_v0 = vadd.f32 %v916_v62, %v1978_v10  ;;  %v1007_v10 = vadd.f32 %v1549_v55, %v1947_v2  ;;  %v1445_v55 = vld [vmem:[%s2200_s4 + $0x3] ss:$0 sm:$0xff]  ;;  %v1197_v62 = vld [vmem:[%s2199_s3 + $0x38] sm:$0xff] }
 0x31e   : > { %1026 = vrot.lane.b32.xlu1 %v1011_v61, %s1849_s14  ;;  %v1196_v61 = vld [vmem:[%s2199_s3 + $0x30] sm:$0xff] }
 0x31f   : > { %v1570_v63 = vpop.f32.mrb[2].mxu1 }
 0x320   : > { %v997_v4 = vpop.f32.mrb[3].mxu1  ;;  %v1013_v3 = vadd.f32 %v1570_v63, %v1963_v8  ;;  %v1677_v63 = vpack.c.bf16 %v1197_v62, %v1196_v61 }
 0x321   : > { %v1012_v5 = vadd.f32 %v997_v4, %v1961_v7  ;;  %v1199_v4 = vld [vmem:[%s2199_s3 + $0x48] sm:$0xff] }
 0x322   : > { %1024 = vrot.lane.b32.xlu1 %v1010_v0, %s1849_s14  ;;  %1678 = vmatprep.subr.bf16.mxu1 %v1677_v63  ;;  %v1198_v0 = vld [vmem:[%s2199_s3 + $0x40] sm:$0xff] }
 0x323   : > { %1032 = vrot.lane.b32.xlu0 %v1012_v5, %s1850_s15  ;;  %1680 = vmatpush3.bf16.msra.mxu1 %v1677_v63  ;;  %v1681_v5 = vpack.c.bf16 %v1199_v4, %v1198_v0 }
 0x325   : > { %1682 = vmatprep.subr.bf16.mxu1 %v1681_v5 }
 0x326   : > { %1034 = vrot.lane.b32.xlu1 %v1013_v3, %s1850_s15  ;;  %v1200_v3 = vld [vmem:[%s2199_s3 + $0x50] sm:$0xff]  ;;  %s2148_s15 = scalar_lea.hbm %s2201_s5, %s1458_s9 }
 0x327   : > { %1684 = vmatpush3.bf16.msra.mxu1 %v1681_v5 }
 0x38b   : > { %v1019_v9 = vpop.permute.xlu1 %1018 }
 0x38c   : > { %v1017_v14 = vpop.permute.xlu0 %1016  ;;  %v1039_v19 = vsel %vm246_vm0, %v1007_v10, %v1019_v9  ;;  %v1201_v9 = vld [vmem:[%s2199_s3 + $0x58] sm:$0xff] }
 0x38d   : > { %v1038_v15 = vsel %vm246_vm0, %v1006_v11, %v1017_v14  ;;  %v1202_v14 = vld [vmem:[%s2199_s3 + $0x60] sm:$0xff]  ;;  %v1203_v11 = vld [vmem:[%s2199_s3 + $0x68] sm:$0xff]  ;;  %v1205_v10 = vld [vmem:[%s2199_s3 + $0x78] sm:$0xff] }
 0x390   : > { %v1027_v13 = vpop.permute.xlu1 %1026 }
 0x391   : > { %v1041_v20 = vsel %vm593_vm2, %v1039_v19, %v1027_v13  ;;  %v1685_v13 = vpack.c.bf16 %v1201_v9, %v1200_v3 }
 0x393   : > { %1686 = vmatprep.subr.bf16.mxu1 %v1685_v13 }
 0x394   : > { %v1025_v16 = vpop.permute.xlu1 %1024  ;;  %1688 = vmatpush3.bf16.msra.mxu1 %v1685_v13 }
 0x395   : > { %v1040_v7 = vsel %vm593_vm2, %v1038_v15, %v1025_v16  ;;  %v1033_v17 = vpop.permute.xlu0 %1032  ;;  %v1689_v15 = vpack.c.bf16 %v1203_v11, %v1202_v14  ;;  %v1204_v16 = vld [vmem:[%s2199_s3 + $0x70] sm:$0xff] }
 0x396   : > { %v1043_v18 = vsel %vm1042_vm3, %v1040_v7, %v1033_v17  ;;  %v1693_v7 = vpack.c.bf16 %v1205_v10, %v1204_v16  ;;  %v1446_v17 = vld [vmem:[%s2200_s4] ss:$0 sm:$0xff] }
 0x397   : > { %v1052_v8 = vsel %vm1051_vm4, %v1043_v18, 0.0  ;;  %1690 = vmatprep.subr.bf16.mxu1 %v1689_v15 }
 0x398   : > { %v1035_v21 = vpop.permute.xlu1 %1034  ;;  %1053 = vadd.xlane.f32.xlu0 %v1052_v8  ;;  %1692 = vmatpush3.bf16.msra.mxu1 %v1689_v15 }
 0x399   : > { %v1044_v1 = vsel %vm1042_vm3, %v1041_v20, %v1035_v21  ;;  %1694 = vmatprep.subr.bf16.mxu1 %v1693_v7 }
 0x39a   : > { %v1055_v22 = vsel %vm1051_vm4, %v1044_v1, 0.0 }
 0x39b   : > { %1056 = vadd.xlane.f32.xlu1 %v1055_v22 }
 0x39c   : > { %1696 = vmatpush3.bf16.msra.mxu1 %v1693_v7 }
 0x425   : > { %v1054_v23 = vpop.xlane.xlu0 %1053 }
 0x426   : > { %v1059_v24 = vmul.f32 0.03125, %v1054_v23 }
 0x428   : > { %v1061_v25 = vsub.f32 %v1043_v18, %v1059_v24  ;;  %v1057_v2 = vpop.xlane.xlu1 %1056 }
 0x429   : > { %v1060_v26 = vmul.f32 0.03125, %v1057_v2 }
 0x42a   : > { %v1063_v27 = vmul.f32 %v1061_v25, %v1061_v25 }
 0x42b   : > { %v1062_v28 = vsub.f32 %v1044_v1, %v1060_v26 }
 0x42c   : > { %v1065_v29 = vsel %vm1051_vm4, %v1063_v27, 0.0 }
 0x42d   : > { %1066 = vadd.xlane.f32.xlu0 %v1065_v29  ;;  %v1064_v30 = vmul.f32 %v1062_v28, %v1062_v28  ;;  %v1449_v29 = vld [vmem:[%s2200_s4 + $0x1] ss:$0 sm:$0xff] }
 0x42f   : > { %v1068_v31 = vsel %vm1051_vm4, %v1064_v30, 0.0 }
 0x431   : > { %1069 = vadd.xlane.f32.xlu0 %v1068_v31 }
 0x4ba   : > { %v1067_v47 = vpop.xlane.xlu0 %1066 }
 0x4bb   : > { %v1071_v48 = vmul.f32 0.03125, %v1067_v47 }
 0x4bd   : > { %v1073_v49 = vadd.f32 1e-05, %v1071_v48 }
 0x4be   : > { %v1070_v50 = vpop.xlane.xlu0 %1069 }
 0x4bf   : > { %1772 = vrsqrt.f32 %v1073_v49  ;;  %v1072_v51 = vmul.f32 0.03125, %v1070_v50 }
 0x4c1   : > { %v1074_v6 = vadd.f32 1e-05, %v1072_v51 }
 0x4c3   : > { %1774 = vrsqrt.f32 %v1074_v6 }
 0x4c9   : > { %v1773_v52 = vpop.eup %1772 }
 0x4ca   : > { %v1077_v54 = vmul.f32 %v1773_v52, %v1061_v25 }
 0x4cc   : > { %v1083_v56 = vmul.f32 %v1444_v53, %v1077_v54  ;;  %v1450_v54 = vld [vmem:[%s2200_s4 + $0x4] ss:$0 sm:$0xff] }
 0x4cd   : > { %v1775_v57 = vpop.eup %1774 }
 0x4ce   : > { %v1078_v58 = vmul.f32 %v1775_v57, %v1062_v28  ;;  %v1089_v12 = vadd.f32 %v1445_v55, %v1083_v56  ;;  %v1451_v57 = vld [vmem:[%s2200_s4 + $0x5] ss:$0 sm:$0xff] }
 0x4d0   : > { %v1084_v59 = vmul.f32 %v1444_v53, %v1078_v58  ;;  %1579 = vmatprep.mubr.msk.f32.mxu0 %vm1051_vm4, %v1089_v12 }
 0x4d2   : > { %v1090_v60 = vadd.f32 %v1445_v55, %v1084_v59 }
 0x4d4   : > { %1580 = vmatmul.mubr.msk.f32.vlgmr.msra.gmra.mrb[12].mxu0 %vm1051_vm4, %v1090_v60 }
 0x5a7   : > { %v1581_v18 = vpop.f32.mrb[12].mxu0 }
 0x5a8   : > { %v1177_v19 = vadd.f32 %v1581_v18, %v1446_v17  ;;  %v1171_v8 = vpop.f32.mrb[13].mxu0 }
 0x5a9   : > { %v1172_v20 = vadd.f32 %v1446_v17, %v1171_v8 }
 0x5aa   : > { %v1183_v21 = vmul.f32 0.70710677, %v1177_v19  ;;  %v1181_v26 = vmul.f32 0.5, %v1177_v19 }
 0x5ab   : > { %v1182_v1 = vmul.f32 0.70710677, %v1172_v20  ;;  %v1180_v25 = vmul.f32 0.5, %v1172_v20 }
 0x5ac   : > { %1776 = verf.f32 %v1183_v21 }
 0x5ad   : > { %1778 = verf.f32 %v1182_v1 }
 0x5b6   : > { %v1777_v22 = vpop.eup %1776 }
 0x5b7   : > { %v1779_v23 = vpop.eup %1778  ;;  %v1187_v24 = vadd.f32 1.0, %v1777_v22 }
 0x5b8   : > { %v1186_v2 = vadd.f32 1.0, %v1779_v23 }
 0x5b9   : > { %v1189_v28 = vmul.f32 %v1187_v24, %v1181_v26 }
 0x5ba   : > { %v1188_v27 = vmul.f32 %v1186_v2, %v1180_v25 }
 0x5bc   : > { %1614 = vmatprep.mubr.f32.mxu1 %v1188_v27 }
 0x5bd   : > { %1615 = vmatmul.mubr.f32.vlgmr.msra.gmra.mrb[4].mxu1 %v1189_v28 }
 0x690   : > { %v1616_v30 = vpop.f32.mrb[4].mxu1 }
 0x691   : > { %v1282_v31 = vadd.f32 %v1616_v30, %v1449_v29  ;;  %v1276_v32 = vpop.f32.mrb[5].mxu1 }
 0x692   : > { %v1277_v33 = vadd.f32 %v1449_v29, %v1276_v32 }
 0x693   : > { %v1286_v34 = vadd.f32 %v1282_v31, %v1090_v60 }
 0x694   : > { %v1285_v35 = vadd.f32 %v1277_v33, %v1089_v12 }
 0x695   : > { %v1290_v36 = vsel %vm1051_vm4, %v1286_v34, 0.0 }
 0x696   : > { %1291 = vadd.xlane.f32.xlu1 %v1290_v36  ;;  %v1287_v37 = vsel %vm1051_vm4, %v1285_v35, 0.0 }
 0x697   : > { %1288 = vadd.xlane.f32.xlu0 %v1287_v37 }
 0x723   : > { %v1292_v38 = vpop.xlane.xlu1 %1291 }
 0x724   : > { %v1294_v39 = vmul.f32 0.03125, %v1292_v38  ;;  %v1289_v40 = vpop.xlane.xlu0 %1288 }
 0x725   : > { %v1293_v41 = vmul.f32 0.03125, %v1289_v40 }
 0x726   : > { %v1296_v42 = vsub.f32 %v1286_v34, %v1294_v39 }
 0x727   : > { %v1295_v43 = vsub.f32 %v1285_v35, %v1293_v41 }
 0x728   : > { %v1298_v44 = vmul.f32 %v1296_v42, %v1296_v42 }
 0x729   : > { %v1297_v45 = vmul.f32 %v1295_v43, %v1295_v43 }
 0x72a   : > { %v1302_v46 = vsel %vm1051_vm4, %v1298_v44, 0.0 }
 0x72b   : > { %1303 = vadd.xlane.f32.xlu1 %v1302_v46  ;;  %v1299_v47 = vsel %vm1051_vm4, %v1297_v45, 0.0 }
 0x72c   : > { %1300 = vadd.xlane.f32.xlu0 %v1299_v47 }
 0x7b8   : > { %v1304_v48 = vpop.xlane.xlu1 %1303 }
 0x7b9   : > { %v1306_v49 = vmul.f32 0.03125, %v1304_v48  ;;  %v1301_v50 = vpop.xlane.xlu0 %1300 }
 0x7ba   : > { %v1305_v51 = vmul.f32 0.03125, %v1301_v50 }
 0x7bb   : > { %v1308_v6 = vadd.f32 1e-05, %v1306_v49 }
 0x7bc   : > { %v1307_v52 = vadd.f32 1e-05, %v1305_v51 }
 0x7bd   : > { %1780 = vrsqrt.f32 %v1308_v6 }
 0x7be   : > { %1782 = vrsqrt.f32 %v1307_v52 }
 0x7c7   : > { %v1781_v53 = vpop.eup %1780 }
 0x7c8   : > { %v1783_v55 = vpop.eup %1782  ;;  %v1312_v56 = vmul.f32 %v1781_v53, %v1296_v42 }
 0x7c9   : > { %v1311_v58 = vmul.f32 %v1783_v55, %v1295_v43 }
 0x7ca   : > { %v1318_v12 = vmul.f32 %v1450_v54, %v1312_v56 }
 0x7cb   : > { %v1317_v59 = vmul.f32 %v1450_v54, %v1311_v58 }
 0x7cc   : > { %v1324_v60 = vadd.f32 %v1451_v57, %v1318_v12 }
 0x7cd   : > { %v1323_v61 = vadd.f32 %v1451_v57, %v1317_v59 }
 0x7ce   : > { %1326 = vst.msk [vmem:[%s228_s10 + $0x8] sm:$0xff] %vm1051_vm4, %v1324_v60 }
 0x7cf   : > { %1325 = vst.msk [vmem:[%s228_s10] sm:$0xff] %vm1051_vm4, %v1323_v61 }
 0x7d0   : > { %1797 = shalt.err (!%p1794_p3)
}
 0x7d1   : > { %s1798_s25 = scalar_lea.hbm %s2148_s15, 256  ;;  %s1802_s7 = scalar_lea.hbm %s2201_s5, 512 }
 0x7d2   : > { %p1799_p4 = scmp.ne.s32.totalorder %s2148_s15, %s1798_s25  ;;  %p1803_p9 = scmp.lt.u32.totalorder %s2148_s15, %s2201_s5 }
 0x7d3   : > { %p1804_p10 = scmp.lt.u32.totalorder %s1802_s7, %s1798_s25  ;;  %p1806_p12 = scmp.lt.u32.totalorder %s1798_s25, %s2148_s15 }
 0x7d4   : > { %p1800_p7 = pnand %p1799_p4, %p1921_p5 }
 0x7d5   : > { %p1805_p11 = por %p1804_p10, %p1803_p9 }
 0x7d6   : > { %p1801_p8 = pneg %p1800_p7 }
 0x7d7   : > { %p1807_p13 = por %p1806_p12, %p1805_p11 }
 0x7d9   : > { %p1808_p0 = pnand %p1807_p13, %p1801_p8 }
 0x7db   : > { %1811 = shalt.err (!%p1808_p0)
}
 0x7dc   : > { %s1852_s10 = smov 128  }
 0x7dd   : > { %1697 = dma.vmem_to_hbm [thread:$0]  (%p1921_p5), %s2150_s11, 256, %s2148_s15, %s2154_s22, %s1852_s10, %s1852_s10, %s1848_s13  }
 0x7de PF: > { %p1703_p1 = scmp.ge.s32.totalorder %s1846_s21, 2  ;;  %s1356_s12 = sand.u32 1, %s1834_s18  }
 0x7df   : > { %s1357_s14 = scalar_lea.sflag [#allocation3], %s1356_s12 }
 0x7e0   : > { %p1700_p2 = pnand %p1703_p1, %p1925_p6 }
 0x7e2   : > { %1829 = dma.done.wait (!%p1700_p2), %s1357_s14, 256  }
 0x7e3   : > { %1831 = vsyncadd (!%p1700_p2), %s1357_s14, 4294967040  ;;  %p15_p3 = scmp.ge.s32.totalorder %s1908_s24, 4   ;;  %s2206_s18 = smov %s1838_s19 }
 0x7e4   : > { %s2207_s19 = smov %s1842_s20  ;;  %s2208_s20 = smov %s1919_s27 }
 0x7e5   : > { %s2209_s21 = smov %s1908_s24  ;;  %17 = sbr.rel (!%p15_p3) target bundleno = 3 (0x3), region = 78 }
 0x7ec   :  { %1362 = vsyncpa [#allocation3], 1 }
 0x7ed   :  { %1364 = vsyncpa [#allocation3 + $0x1], 1 }

</bundles_post_ra>
